<compile_context>
chip_gen: v5e
topology: v5e:2x2
jax: 0.10.0
libtpu: 0.0.40
codegen_flags: <defaults>
</compile_context>

<pallas_src>
import functools
import math

import jax
import jax.numpy as jnp
from jax.experimental import pallas as pl
from jax.experimental.pallas import tpu as pltpu


def _inverse_sigmoid(x, eps=1e-5):
    x = jnp.clip(x, 0.0, 1.0)
    return jnp.log(jnp.maximum(x, eps)) - jnp.log(jnp.maximum(1.0 - x, eps))


# ----------------------------- Pallas kernel -------------------------------

def _detr_head_kernel(hs_ref, ref_ref,
                      w1_ref, b1_ref, w2_ref, b2_ref,
                      wc_ref, wb_ref, bo_ref,
                      out_ref, *, num_classes):
    """One (refine, row-tile, decoder-layer) grid step.

    hs_ref  : (T, D)  bf16 decoder hidden states tile (T rows of B*Q)
    ref_ref : (T, P)  f32 inverse_sigmoid(reference) offset, zeros outside
                       cols [C, C+2); resident across the L grid axis
    w1,b1   : (D, D) bf16 / (1, D) f32   bbox MLP layer 1
    w2,b2   : (D, D) bf16 / (1, D) f32   bbox MLP layer 2
    wc_ref  : (D, P)  bf16 class weight in cols [0, C), zeros elsewhere
    wb_ref  : (D, P)  bf16 bbox MLP output weight in cols [C, C+4), zeros else
    bo_ref  : (1, P)  f32 fused bias [bc | b3 | 0]
    out_ref : (T, P)  f32 lane-dense output slab [logits | sigmoid(boxes) | 0]
    """
    hs = hs_ref[...]                                              # (T, D) bf16

    # --- bbox MLP hidden layers: Linear+ReLU, Linear+ReLU (bf16 in, f32 acc)
    h = jnp.maximum(
        jnp.dot(hs, w1_ref[...], preferred_element_type=jnp.float32)
        + b1_ref[...], 0.0)
    h = h.astype(hs.dtype)
    h = jnp.maximum(
        jnp.dot(h, w2_ref[...], preferred_element_type=jnp.float32)
        + b2_ref[...], 0.0)
    h = h.astype(hs.dtype)

    # --- fused output heads -> one lane-dense (T, P) slab --------------------
    # class head consumes hs, box head consumes h; weights live in disjoint
    # column ranges, so the sum is the fused result.  Reference offset is
    # zero outside the (cx, cy) columns, so logits are unaffected.
    comb = (jnp.dot(hs, wc_ref[...], preferred_element_type=jnp.float32)
            + jnp.dot(h, wb_ref[...], preferred_element_type=jnp.float32)
            + bo_ref[...] + ref_ref[...])                         # (T, P) f32

    # sigmoid only on the 4 box columns; mask built from a (1, P) iota so no
    # (T, P) int32/bool intermediates are materialized.
    col = jax.lax.broadcasted_iota(jnp.int32, (1, comb.shape[-1]), 1)
    is_box = (col >= num_classes) & (col < num_classes + 4)
    out_ref[...] = jnp.where(is_box, jax.nn.sigmoid(comb), comb)


def detr_heads(hs, references, params, *, max_tile_rows=1024,
               matmul_dtype=jnp.bfloat16):
    """hs: [R, L, B, Q, D]  references: [R, B, Q, 2]  -> (logits, boxes)

    logits: [R, L, B, Q, C]    boxes: [R, L, B, Q, 4]
    """
    R, L, B, Q, D = hs.shape
    C = params['wc'].shape[-1]
    P = 128 * pl.cdiv(C + 4, 128)          # lane-dense output width
    BQ = B * Q

    # --- row tiling of the B*Q dimension ------------------------------------
    row_align = 16                          # bf16 sublane packing (covers f32's 8)
    BQp = row_align * pl.cdiv(BQ, row_align)
    tile = min(max_tile_rows, BQp)
    tile = row_align * max(1, tile // row_align)
    BQp = tile * pl.cdiv(BQp, tile)
    T = BQp // tile

    hs_flat = hs.reshape(R, L, BQ, D)
    if BQp != BQ:
        hs_flat = jnp.pad(hs_flat, ((0, 0), (0, 0), (0, BQp - BQ), (0, 0)))
    hs_flat = hs_flat.astype(matmul_dtype)

    # --- reference offset: inverse_sigmoid on the tiny array, once, in f32 ---
    # Zero-padded into cols [C, C+2) of a (R, BQp, P) slab (no L broadcast).
    ref_off = _inverse_sigmoid(references.reshape(R, BQ, 2).astype(jnp.float32))
    ref_slab = jnp.zeros((R, BQp, P), jnp.float32).at[:, :BQ, C:C + 2].set(ref_off)

    # --- lane-padded fused output weights / bias (bf16 weights, f32 bias) ----
    wo_cls = (jnp.zeros((R, D, P), jnp.float32)
              .at[..., :C].set(params['wc'])).astype(matmul_dtype)
    wo_box = (jnp.zeros((R, D, P), jnp.float32)
              .at[..., C:C + 4].set(params['w3'])).astype(matmul_dtype)
    bo = jnp.zeros((R, 1, P), jnp.float32)
    bo = bo.at[..., :C].set(params['bc']).at[..., C:C + 4].set(params['b3'])

    w1 = params['w1'].astype(matmul_dtype)
    w2 = params['w2'].astype(matmul_dtype)
    b1 = params['b1'].astype(jnp.float32)
    b2 = params['b2'].astype(jnp.float32)

    # --- grid: (R, T, L); weights resident, ref resident across L ------------
    grid = (R, T, L)
    in_specs = [
        pl.BlockSpec((None, None, tile, D), lambda r, t, l: (r, l, t, 0)),  # hs
        pl.BlockSpec((None, tile, P), lambda r, t, l: (r, t, 0)),           # ref
        pl.BlockSpec((None, D, D), lambda r, t, l: (r, 0, 0)),              # w1
        pl.BlockSpec((None, 1, D), lambda r, t, l: (r, 0, 0)),              # b1
        pl.BlockSpec((None, D, D), lambda r, t, l: (r, 0, 0)),              # w2
        pl.BlockSpec((None, 1, D), lambda r, t, l: (r, 0, 0)),              # b2
        pl.BlockSpec((None, D, P), lambda r, t, l: (r, 0, 0)),              # wo_cls
        pl.BlockSpec((None, D, P), lambda r, t, l: (r, 0, 0)),              # wo_box
        pl.BlockSpec((None, 1, P), lambda r, t, l: (r, 0, 0)),              # bo
    ]
    out_specs = pl.BlockSpec((None, None, tile, P), lambda r, t, l: (r, l, t, 0))
    out_shape = jax.ShapeDtypeStruct((R, L, BQp, P), jnp.float32)

    # --- VMEM budget: double-buffered streamed tiles + resident weights ------
    bts = jnp.dtype(matmul_dtype).itemsize
    stream = 2 * (tile * D * bts + tile * P * 4 + tile * P * 4)
    resident = 2 * (2 * D * D * bts + 2 * D * P * bts + 2 * D * 4 + 2 * P * 4)
    interm = 4 * tile * P * 4
    vmem_limit = int(min(max(2 * (stream + resident + interm), 32 << 20), 64 << 20))

    out_slab = pl.pallas_call(
        functools.partial(_detr_head_kernel, num_classes=C),
        grid_spec=pltpu.PrefetchScalarGridSpec(
            num_scalar_prefetch=0, grid=grid,
            in_specs=in_specs, out_specs=out_specs),
        out_shape=out_shape,
        compiler_params=pltpu.CompilerParams(
            dimension_semantics=("parallel", "parallel", "arbitrary"),
            vmem_limit_bytes=vmem_limit),
    )(hs_flat, ref_slab, w1, b1, w2, b2, wo_cls, wo_box, bo)

    out_slab = out_slab[:, :, :BQ]
    logits = out_slab[..., :C].reshape(R, L, B, Q, C)
    boxes = out_slab[..., C:C + 4].reshape(R, L, B, Q, 4)
    return logits, boxes


# ------------------------- parameter construction ---------------------------

def make_params(key, R, D, C):
    """Deterministic synthetic weights, following the module's __init__ rules:
       - class head bias = -log((1-p)/p), p = 0.01
       - bbox MLP last layer weight & bias = 0
    Linear weights are stored (in, out); applied as x @ W + b."""
    k1, k2, kc = jax.random.split(key, 3)
    scale = 1.0 / math.sqrt(D)
    bias_value = -math.log((1.0 - 0.01) / 0.01)
    params = {
        'w1': jax.random.uniform(k1, (R, D, D), jnp.float32, -scale, scale),
        'b1': jnp.zeros((R, 1, D), jnp.float32),
        'w2': jax.random.uniform(k2, (R, D, D), jnp.float32, -scale, scale),
        'b2': jnp.zeros((R, 1, D), jnp.float32),
        'w3': jnp.zeros((R, D, 4), jnp.float32),          # nn.init.constant_(w, 0)
        'b3': jnp.zeros((R, 1, 4), jnp.float32),          # nn.init.constant_(b, 0)
        'wc': jax.random.uniform(kc, (R, D, C), jnp.float32, -scale, scale),
        'bc': jnp.full((R, 1, C), bias_value, jnp.float32),
    }
    return params


def stub_backbone_transformer(key, x_nchw, R, L, Q, D):
    """Deterministic stand-in for the external backbone + conditional transformer.
    Produces decoder hidden states Hs [R, L, B, Q, D] and references [R, B, Q, 2]."""
    B = x_nchw.shape[0]
    kq, kp, kr = jax.random.split(key, 3)
    pooled = jnp.mean(x_nchw, axis=(2, 3))                        # [B, Cin]
    proj = jax.random.normal(kp, (x_nchw.shape[1], D), jnp.float32) * 0.1
    img_tok = jnp.tanh(pooled @ proj)                             # [B, D]
    query_embed = jax.random.normal(kq, (R, Q, D), jnp.float32) * 0.1
    lvl_scale = (1.0 + jnp.arange(L, dtype=jnp.float32))[None, :, None, None, None]
    hs = jnp.tanh(img_tok[None, None, :, None, :]
                  + query_embed[:, None, None, :, :] * lvl_scale)  # [R, L, B, Q, D]
    ref_w = jax.random.normal(kr, (D, 2), jnp.float32) * 0.5
    references = jax.nn.sigmoid(
        jnp.einsum('rqd,dt->rqt', query_embed, ref_w))[:, None]    # [R, 1, Q, 2]
    references = jnp.broadcast_to(references, (R, B, Q, 2))
    return hs.astype(jnp.float32), references.astype(jnp.float32)


# --------------------------- JAX reference check ----------------------------

def _ref_heads(hs, references, params, matmul_dtype=jnp.float32):
    """Pure-JAX reference.  matmul_dtype=bfloat16 simulates the kernel's
    operand quantization (f32 accumulation) for a tight comparison."""
    def cast(x):
        return x.astype(matmul_dtype).astype(jnp.float32)
    hp = jax.lax.Precision.HIGHEST
    R, L = hs.shape[:2]
    logits, boxes = [], []
    for r in range(R):
        rl, rb = [], []
        rbs = _inverse_sigmoid(references[r])
        w1, w2 = cast(params['w1'][r]), cast(params['w2'][r])
        w3, wc = cast(params['w3'][r]), cast(params['wc'][r])
        for l in range(L):
            x = cast(hs[r, l])
            h = jnp.maximum(jnp.dot(x, w1, precision=hp) + params['b1'][r], 0.0)
            h = cast(h)
            h = jnp.maximum(jnp.dot(h, w2, precision=hp) + params['b2'][r], 0.0)
            h = cast(h)
            tmp = jnp.dot(h, w3, precision=hp) + params['b3'][r]
            tmp = tmp.at[..., :2].add(rbs)
            rb.append(jax.nn.sigmoid(tmp))
            rl.append(jnp.dot(x, wc, precision=hp) + params['bc'][r])
        logits.append(jnp.stack(rl))
        boxes.append(jnp.stack(rb))
    return jnp.stack(logits), jnp.stack(boxes)


# --------------------------------- main --------------------------------------

if __name__ == "__main__":
    B, Cin, H, W = 2, 3, 16, 16      # input image (NCHW, like PyTorch)
    num_queries = 8
    hidden_dim = 32
    num_classes = 4
    num_refines = 1
    num_dec_layers = 3
    R, L, Q, D, C = num_refines + 1, num_dec_layers, num_queries, hidden_dim, num_classes

    key = jax.random.PRNGKey(0)
    kx, kp, ks = jax.random.split(key, 3)
    x = jax.random.normal(kx, (B, Cin, H, W), jnp.float32)

    params = make_params(kp, R, D, C)
    hs, references = stub_backbone_transformer(ks, x, R, L, Q, D)

    logits, boxes = detr_heads(hs, references, params)
    logits = jax.block_until_ready(logits)
    boxes = jax.block_until_ready(boxes)

    # Conditional_DETR output dict: per refine_idx, last decoder layer only.
    out = {r: {'pred_logits': logits[r, -1], 'pred_boxes': boxes[r, -1]}
           for r in range(R)}

    # Tight check vs bf16-operand / f32-accumulation reference (same math as
    # the kernel), loose check vs the pure-f32 reference (bf16 quantization
    # bound) — tolerance loosened rather than silently widened.
    ref_logits_bf, ref_boxes_bf = _ref_heads(hs, references, params, jnp.bfloat16)
    ref_logits_f32, ref_boxes_f32 = _ref_heads(hs, references, params, jnp.float32)
    assert jnp.max(jnp.abs(logits - ref_logits_bf)) < 2e-3
    assert jnp.max(jnp.abs(boxes - ref_boxes_bf)) < 2e-3
    assert jnp.max(jnp.abs(logits - ref_logits_f32)) < 1e-1
    assert jnp.max(jnp.abs(boxes - ref_boxes_f32)) < 1e-1
    assert out[0]['pred_logits'].shape == (B, Q, C)
    assert out[0]['pred_boxes'].shape == (B, Q, 4)

    print("KERNEL_OK")
</pallas_src>

<mosaic_0001>
module attributes {stable_mosaic.version = 11 : i64} {
  func.func @_detr_head_kernel(%arg0: i32, %arg1: i32, %arg2: i32, %arg3: memref<1x1x16x32xbf16, #tpu.memory_space<vmem>>, %arg4: memref<1x16x128xf32, #tpu.memory_space<vmem>>, %arg5: memref<1x32x32xbf16, #tpu.memory_space<vmem>>, %arg6: memref<1x1x32xf32, #tpu.memory_space<vmem>>, %arg7: memref<1x32x32xbf16, #tpu.memory_space<vmem>>, %arg8: memref<1x1x32xf32, #tpu.memory_space<vmem>>, %arg9: memref<1x32x128xbf16, #tpu.memory_space<vmem>>, %arg10: memref<1x32x128xbf16, #tpu.memory_space<vmem>>, %arg11: memref<1x1x128xf32, #tpu.memory_space<vmem>>, %arg12: memref<1x1x16x128xf32, #tpu.memory_space<vmem>>) attributes {dimension_semantics = [#tpu.dimension_semantics<parallel>, #tpu.dimension_semantics<parallel>, #tpu.dimension_semantics<arbitrary>], iteration_bounds = array<i64: 2, 1, 3>, scalar_prefetch = 0 : i64, scratch_operands = 0 : i64, tpu.core_type = #tpu.core_type<tc>, window_params = [{transform_indices = @transform_0, window_bounds = array<i64: 1, 1, 16, 32>}, {transform_indices = @transform_1, window_bounds = array<i64: 1, 16, 128>}, {transform_indices = @transform_2, window_bounds = array<i64: 1, 32, 32>}, {transform_indices = @transform_3, window_bounds = array<i64: 1, 1, 32>}, {transform_indices = @transform_4, window_bounds = array<i64: 1, 32, 32>}, {transform_indices = @transform_5, window_bounds = array<i64: 1, 1, 32>}, {transform_indices = @transform_6, window_bounds = array<i64: 1, 32, 128>}, {transform_indices = @transform_7, window_bounds = array<i64: 1, 32, 128>}, {transform_indices = @transform_8, window_bounds = array<i64: 1, 1, 128>}, {transform_indices = @transform_9, window_bounds = array<i64: 1, 1, 16, 128>}]} {
    %c0 = arith.constant 0 : index
    %c0_0 = arith.constant 0 : index
    %c0_1 = arith.constant 0 : index
    %c0_2 = arith.constant 0 : index
    %0 = vector.load %arg3[%c0, %c0_0, %c0_1, %c0_2] : memref<1x1x16x32xbf16, #tpu.memory_space<vmem>>, vector<1x1x16x32xbf16>
    %1 = vector.shape_cast %0 : vector<1x1x16x32xbf16> to vector<16x32xbf16>
    %c0_3 = arith.constant 0 : index
    %c0_4 = arith.constant 0 : index
    %c0_5 = arith.constant 0 : index
    %2 = vector.load %arg5[%c0_3, %c0_4, %c0_5] : memref<1x32x32xbf16, #tpu.memory_space<vmem>>, vector<1x32x32xbf16>
    %3 = vector.shape_cast %2 : vector<1x32x32xbf16> to vector<32x32xbf16>
    %cst = arith.constant dense<0.000000e+00> : vector<16x32xf32>
    %4 = tpu.matmul %1, %3, %cst {dimension_numbers = #tpu.dot_dimension_numbers<[1], [0], [0], [1], [0, 0, 1, 1], [], []>} : vector<16x32xbf16>, vector<32x32xbf16>, vector<16x32xf32> -> vector<16x32xf32>
    %c0_6 = arith.constant 0 : index
    %c0_7 = arith.constant 0 : index
    %c0_8 = arith.constant 0 : index
    %5 = vector.load %arg6[%c0_6, %c0_7, %c0_8] : memref<1x1x32xf32, #tpu.memory_space<vmem>>, vector<1x1x32xf32>
    %6 = vector.shape_cast %5 : vector<1x1x32xf32> to vector<1x32xf32>
    %7 = vector.broadcast %6 : vector<1x32xf32> to vector<16x32xf32>
    %8 = arith.addf %4, %7 : vector<16x32xf32>
    %cst_9 = arith.constant 0.000000e+00 : f32
    %9 = vector.broadcast %cst_9 : f32 to vector<16x32xf32>
    %10 = arith.maximumf %8, %9 : vector<16x32xf32>
    %11 = arith.truncf %10 : vector<16x32xf32> to vector<16x32xbf16>
    %c0_10 = arith.constant 0 : index
    %c0_11 = arith.constant 0 : index
    %c0_12 = arith.constant 0 : index
    %12 = vector.load %arg7[%c0_10, %c0_11, %c0_12] : memref<1x32x32xbf16, #tpu.memory_space<vmem>>, vector<1x32x32xbf16>
    %13 = vector.shape_cast %12 : vector<1x32x32xbf16> to vector<32x32xbf16>
    %cst_13 = arith.constant dense<0.000000e+00> : vector<16x32xf32>
    %14 = tpu.matmul %11, %13, %cst_13 {dimension_numbers = #tpu.dot_dimension_numbers<[1], [0], [0], [1], [0, 0, 1, 1], [], []>} : vector<16x32xbf16>, vector<32x32xbf16>, vector<16x32xf32> -> vector<16x32xf32>
    %c0_14 = arith.constant 0 : index
    %c0_15 = arith.constant 0 : index
    %c0_16 = arith.constant 0 : index
    %15 = vector.load %arg8[%c0_14, %c0_15, %c0_16] : memref<1x1x32xf32, #tpu.memory_space<vmem>>, vector<1x1x32xf32>
    %16 = vector.shape_cast %15 : vector<1x1x32xf32> to vector<1x32xf32>
    %17 = vector.broadcast %16 : vector<1x32xf32> to vector<16x32xf32>
    %18 = arith.addf %14, %17 : vector<16x32xf32>
    %cst_17 = arith.constant 0.000000e+00 : f32
    %19 = vector.broadcast %cst_17 : f32 to vector<16x32xf32>
    %20 = arith.maximumf %18, %19 : vector<16x32xf32>
    %21 = arith.truncf %20 : vector<16x32xf32> to vector<16x32xbf16>
    %c0_18 = arith.constant 0 : index
    %c0_19 = arith.constant 0 : index
    %c0_20 = arith.constant 0 : index
    %22 = vector.load %arg9[%c0_18, %c0_19, %c0_20] : memref<1x32x128xbf16, #tpu.memory_space<vmem>>, vector<1x32x128xbf16>
    %23 = vector.shape_cast %22 : vector<1x32x128xbf16> to vector<32x128xbf16>
    %cst_21 = arith.constant dense<0.000000e+00> : vector<16x128xf32>
    %24 = tpu.matmul %1, %23, %cst_21 {dimension_numbers = #tpu.dot_dimension_numbers<[1], [0], [0], [1], [0, 0, 1, 1], [], []>} : vector<16x32xbf16>, vector<32x128xbf16>, vector<16x128xf32> -> vector<16x128xf32>
    %c0_22 = arith.constant 0 : index
    %c0_23 = arith.constant 0 : index
    %c0_24 = arith.constant 0 : index
    %25 = vector.load %arg10[%c0_22, %c0_23, %c0_24] : memref<1x32x128xbf16, #tpu.memory_space<vmem>>, vector<1x32x128xbf16>
    %26 = vector.shape_cast %25 : vector<1x32x128xbf16> to vector<32x128xbf16>
    %cst_25 = arith.constant dense<0.000000e+00> : vector<16x128xf32>
    %27 = tpu.matmul %21, %26, %cst_25 {dimension_numbers = #tpu.dot_dimension_numbers<[1], [0], [0], [1], [0, 0, 1, 1], [], []>} : vector<16x32xbf16>, vector<32x128xbf16>, vector<16x128xf32> -> vector<16x128xf32>
    %28 = arith.addf %24, %27 : vector<16x128xf32>
    %c0_26 = arith.constant 0 : index
    %c0_27 = arith.constant 0 : index
    %c0_28 = arith.constant 0 : index
    %29 = vector.load %arg11[%c0_26, %c0_27, %c0_28] : memref<1x1x128xf32, #tpu.memory_space<vmem>>, vector<1x1x128xf32>
    %30 = vector.shape_cast %29 : vector<1x1x128xf32> to vector<1x128xf32>
    %31 = vector.broadcast %30 : vector<1x128xf32> to vector<16x128xf32>
    %32 = arith.addf %28, %31 : vector<16x128xf32>
    %c0_29 = arith.constant 0 : index
    %c0_30 = arith.constant 0 : index
    %c0_31 = arith.constant 0 : index
    %33 = vector.load %arg4[%c0_29, %c0_30, %c0_31] : memref<1x16x128xf32, #tpu.memory_space<vmem>>, vector<1x16x128xf32>
    %34 = vector.shape_cast %33 : vector<1x16x128xf32> to vector<16x128xf32>
    %35 = arith.addf %32, %34 : vector<16x128xf32>
    %36 = tpu.iota {dimensions = array<i32: 1>} : vector<1x128xi32>
    %c4_i32 = arith.constant 4 : i32
    %37 = vector.broadcast %c4_i32 : i32 to vector<1x128xi32>
    %38 = arith.cmpi sge, %36, %37 : vector<1x128xi32>
    %c8_i32 = arith.constant 8 : i32
    %39 = vector.broadcast %c8_i32 : i32 to vector<1x128xi32>
    %40 = arith.cmpi slt, %36, %39 : vector<1x128xi32>
    %41 = arith.andi %38, %40 : vector<1x128xi1>
    %42 = arith.negf %35 : vector<16x128xf32>
    %43 = math.exp %42 : vector<16x128xf32>
    %cst_32 = arith.constant 1.000000e+00 : f32
    %44 = vector.broadcast %cst_32 : f32 to vector<16x128xf32>
    %45 = arith.addf %44, %43 : vector<16x128xf32>
    %46 = arith.divf %44, %45 : vector<16x128xf32>
    %47 = vector.shape_cast %41 : vector<1x128xi1> to vector<1x128xi1>
    %48 = vector.broadcast %47 : vector<1x128xi1> to vector<16x128xi1>
    %49 = arith.select %48, %46, %35 : vector<16x128xi1>, vector<16x128xf32>
    %c0_33 = arith.constant 0 : index
    %c0_34 = arith.constant 0 : index
    %c0_35 = arith.constant 0 : index
    %c0_36 = arith.constant 0 : index
    %50 = vector.load %arg12[%c0_33, %c0_34, %c0_35, %c0_36] : memref<1x1x16x128xf32, #tpu.memory_space<vmem>>, vector<1x1x16x128xf32>
    %51 = vector.shape_cast %50 : vector<1x1x16x128xf32> to vector<16x128xf32>
    %52 = vector.shape_cast %49 : vector<16x128xf32> to vector<1x1x16x128xf32>
    tpu.vector_store %arg12[%c0_33, %c0_34, %c0_35, %c0_36], %52 {strides = array<i32>} : memref<1x1x16x128xf32, #tpu.memory_space<vmem>>, vector<1x1x16x128xf32>,
    return
  }
  func.func @transform_0(%arg0: i32, %arg1: i32, %arg2: i32) -> (i32, i32, i32, i32) {
    %c0_i32 = arith.constant 0 : i32
    %c0_i32_0 = arith.constant 0 : i32
    return %arg0, %arg2, %arg1, %c0_i32 : i32, i32, i32, i32
  }
  func.func @transform_1(%arg0: i32, %arg1: i32, %arg2: i32) -> (i32, i32, i32) {
    %c0_i32 = arith.constant 0 : i32
    %c0_i32_0 = arith.constant 0 : i32
    return %arg0, %arg1, %c0_i32 : i32, i32, i32
  }
  func.func @transform_2(%arg0: i32, %arg1: i32, %arg2: i32) -> (i32, i32, i32) {
    %c0_i32 = arith.constant 0 : i32
    %c0_i32_0 = arith.constant 0 : i32
    %c0_i32_1 = arith.constant 0 : i32
    return %arg0, %c0_i32, %c0_i32_0 : i32, i32, i32
  }
  func.func @transform_3(%arg0: i32, %arg1: i32, %arg2: i32) -> (i32, i32, i32) {
    %c0_i32 = arith.constant 0 : i32
    %c0_i32_0 = arith.constant 0 : i32
    %c0_i32_1 = arith.constant 0 : i32
    return %arg0, %c0_i32, %c0_i32_0 : i32, i32, i32
  }
  func.func @transform_4(%arg0: i32, %arg1: i32, %arg2: i32) -> (i32, i32, i32) {
    %c0_i32 = arith.constant 0 : i32
    %c0_i32_0 = arith.constant 0 : i32
    %c0_i32_1 = arith.constant 0 : i32
    return %arg0, %c0_i32, %c0_i32_0 : i32, i32, i32
  }
  func.func @transform_5(%arg0: i32, %arg1: i32, %arg2: i32) -> (i32, i32, i32) {
    %c0_i32 = arith.constant 0 : i32
    %c0_i32_0 = arith.constant 0 : i32
    %c0_i32_1 = arith.constant 0 : i32
    return %arg0, %c0_i32, %c0_i32_0 : i32, i32, i32
  }
  func.func @transform_6(%arg0: i32, %arg1: i32, %arg2: i32) -> (i32, i32, i32) {
    %c0_i32 = arith.constant 0 : i32
    %c0_i32_0 = arith.constant 0 : i32
    %c0_i32_1 = arith.constant 0 : i32
    return %arg0, %c0_i32, %c0_i32_0 : i32, i32, i32
  }
  func.func @transform_7(%arg0: i32, %arg1: i32, %arg2: i32) -> (i32, i32, i32) {
    %c0_i32 = arith.constant 0 : i32
    %c0_i32_0 = arith.constant 0 : i32
    %c0_i32_1 = arith.constant 0 : i32
    return %arg0, %c0_i32, %c0_i32_0 : i32, i32, i32
  }
  func.func @transform_8(%arg0: i32, %arg1: i32, %arg2: i32) -> (i32, i32, i32) {
    %c0_i32 = arith.constant 0 : i32
    %c0_i32_0 = arith.constant 0 : i32
    %c0_i32_1 = arith.constant 0 : i32
    return %arg0, %c0_i32, %c0_i32_0 : i32, i32, i32
  }
  func.func @transform_9(%arg0: i32, %arg1: i32, %arg2: i32) -> (i32, i32, i32, i32) {
    %c0_i32 = arith.constant 0 : i32
    %c0_i32_0 = arith.constant 0 : i32
    return %arg0, %arg2, %arg1, %c0_i32 : i32, i32, i32, i32
  }
}

</mosaic_0001>

<bundles_post_ra>
// kernel: tpu_custom_call.1
= control target key start
LH: loop header
LB: loop body
LE: loop exit
PB: predicated region body
PF: predicated region fallthrough
CT: control target
= control target key end

     0   :  { %s2061_s0 = inlined_call_operand.hbm [shape: bf16[2,3,16,32], index: 0, kind: input, shape index: {}]   ;;  %s2062_s1 = inlined_call_operand.hbm [shape: f32[2,16,128], index: 1, kind: input, shape index: {}]   ;;  %s2063_s2 = inlined_call_operand.hbm [shape: bf16[2,32,32], index: 2, kind: input, shape index: {}]   ;;  %s2064_s3 = inlined_call_operand.vmem [shape: f32[2,1,32], index: 3, kind: input, shape index: {}]   ;;  %s2065_s4 = inlined_call_operand.hbm [shape: bf16[2,32,32], index: 4, kind: input, shape index: {}]   ;;  %s2066_s5 = inlined_call_operand.vmem [shape: f32[2,1,32], index: 5, kind: input, shape index: {}]   ;;  %s2067_s6 = inlined_call_operand.hbm [shape: bf16[2,32,128], index: 6, kind: input, shape index: {}]   ;;  %s2068_s7 = inlined_call_operand.hbm [shape: bf16[2,32,128], index: 7, kind: input, shape index: {}]   ;;  %s2069_s8 = inlined_call_operand.vmem [shape: f32[2,1,128], index: 8, kind: input, shape index: {}]   ;;  %s2070_s9 = inlined_call_operand.hbm [shape: f32[2,3,16,128], index: 9, kind: output, shape index: {}]  }
   0x1   :  { %2092 = sst [smem:[#allocation33_spill]] %s2062_s1 }
   0x2   :  { %2093 = sst [smem:[#allocation34_spill]] %s2064_s3 }
   0x3   :  { %2094 = sst [smem:[#allocation35_spill]] %s2065_s4 }
   0x4   :  { %2095 = sst [smem:[#allocation36_spill]] %s2066_s5 }
   0x5   :  { %2096 = sst [smem:[#allocation37_spill]] %s2069_s8 }
   0x6   :  { %2097 = sst [smem:[#allocation38_spill]] %s2070_s9 }
   0x7   :  { %14 = vsyncpa [#allocation3], 0 }
   0x8   :  { %16 = vsyncpa [#allocation3 + $0x1], 0 }
   0x9   :  { %17 = vsyncpa [#allocation6], 0 }
   0xa   :  { %19 = vsyncpa [#allocation6 + $0x1], 0 }
   0xb   :  { %20 = vsyncpa [#allocation9], 0 }
   0xc   :  { %22 = vsyncpa [#allocation9 + $0x1], 0 }
   0xd   :  { %23 = vsyncpa [#allocation12], 0 }
   0xe   :  { %25 = vsyncpa [#allocation12 + $0x1], 0 }
   0xf   :  { %26 = vsyncpa [#allocation4], 0 }
  0x10   :  { %28 = vsyncpa [#allocation4 + $0x1], 0  ;;  %s1713_s30 = smov 0   ;;  %s1715_s10 = smov 0  }
  0x11   :  { %s1717_s11 = smov 0   ;;  %s1719_s12 = smov 0  }
  0x12   :  { %s1721_s13 = smov 0   ;;  %s1723_s14 = smov 0  }
  0x13   :  { %s1725_s15 = smov 0   ;;  %s1727_s16 = smov 0  }
  0x14   :  { %s1729_s17 = smov 0   ;;  %s1731_s18 = smov 0  }
  0x15   :  { %s1733_s19 = smov 0  }
  0x16 LB: > { %2098 = sst [smem:[#allocation19_spill]] %s1619_s10  ;;  %p72_p0 = scmp.eq.s32.totalorder %s1655_s19, 0  ;;  %s1655_s19 = sphi %s1733_s19, %s34_s19   ;;  %s1651_s18 = sphi %s1731_s18, %s2147_s18   ;;  %s1647_s17 = sphi %s1729_s17, %s2146_s17   ;;  %s1643_s16 = sphi %s1727_s16, %s2145_s16   ;;  %s1639_s15 = sphi %s1725_s15, %s2152_s15   ;;  %s1635_s14 = sphi %s1723_s14, %s2143_s14   ;;  %s1631_s13 = sphi %s1721_s13, %s2151_s13   ;;  %s1627_s12 = sphi %s1719_s12, %s2150_s12   ;;  %s1623_s11 = sphi %s1717_s11, %s2149_s11   ;;  %s1619_s10 = sphi %s1715_s10, %s2148_s10   ;;  %s1615_s30 = sphi %s1713_s30, %s2140_s30  }
  0x17   : > { %2099 = sst [smem:[#allocation20_spill]] %s1635_s14  ;;  %p99_p1 = scmp.ne.s32.totalorder %s1623_s11, %s1619_s10 }
  0x18   : > { %2100 = sst [smem:[#allocation21_spill]] %s1639_s15  ;;  %p105_p2 = scmp.ne.s32.totalorder %s1619_s10, %s1615_s30 }
  0x19   : > { %2101 = sst [smem:[#allocation22_spill]] %s1643_s16  ;;  %p2077_p3 = scmp.lt.s32.totalorder %s1655_s19, 6 }
  0x1a   : > { %2102 = sst [smem:[#allocation23_spill]] %s1647_s17  ;;  %p101_p4 = por %p99_p1, %p72_p0 }
  0x1b   : > { %2103 = sst [smem:[#allocation24_spill]] %s1651_s18  ;;  %s367_s21 = sand.u32 1, %s1655_s19  }
  0x1c   : > { %s2072_s22 = sand.u32 1, %s1623_s11   ;;  %s1784_s24 = sshll.u32 %s1651_s18, 4 }
  0x1d   : > { %s1781_s23 = sshll.u32 %s2072_s22, 4  ;;  %s2104_s1 = sld [smem:[#allocation33_spill]] }
  0x1e   : > { %s371_s29 = scalar_lea.vmem [#allocation5], %s1781_s23  ;;  %p1793_p5 = pnand %p2077_p3, %p101_p4 }
  0x1f   : > { %s381_s20 = sshll.u32 %s371_s29, 4  ;;  %p1126_p6 = scmp.ge.s32.totalorder %s1655_s19, 1  ;;  %s382_s20 = int_to_ptr.vmem [resolvable:$true] %s381_s20 }
  0x20   : > { %p495_p7 = scmp.lt.s32.totalorder %s1655_s19, 7  ;;  %s1799_s22 = scalar_lea.sflag [#allocation6], %s367_s21 }
  0x21   : > { %s1657_s25 = smov 128   ;;  %s1658_s26 = smov 8  }
  0x22   : > { %p1804_p8 = pnand %p1126_p6, %p495_p7  ;;  %s2107_s4 = sld [smem:[#allocation35_spill]] }
  0x23   : > { %s378_s27 = scalar_lea.hbm %s2104_s1, %s1784_s24  ;;  %s423_s5 = scalar_lea.vmem [#allocation8], %s1781_s23 }
  0x24   : > { %s379_s28 = sshll.u32 %s378_s27, 4  ;;  %s431_s3 = sshll.u32 %s423_s5, 4  ;;  %s380_s28 = int_to_ptr.hbm [resolvable:$true] %s379_s28  ;;  %s432_s3 = int_to_ptr.vmem [resolvable:$true] %s431_s3 }
  0x25   : > { %1217 = dma.hbm_to_vmem [thread:$0]  (!%p1793_p5), %s380_s28, 256, %s382_s20, %s1799_s22, %s1657_s25, %s1657_s25, %s1658_s26  }
  0x26   : > { %s2106_s27 = scalar_select %p1804_p8, 1, 0 }
  0x27   : > { %s1813_s20 = scalar_lea.sflag [#allocation9], %s367_s21  ;;  %s2073_s1 = smov 64  }
  0x28   : > { %s428_s15 = scalar_lea.hbm %s2107_s4, %s1784_s24  ;;  %s2075_s28 = smov 4  }
  0x29   : > { %s429_s8 = sshll.u32 %s428_s15, 4  ;;  %s1822_s15 = sadd.s32 4294967295, %s1655_s19   ;;  %s430_s8 = int_to_ptr.hbm [resolvable:$true] %s429_s8 }
  0x2a   : > { %1223 = dma.hbm_to_vmem [thread:$0]  (!%p1793_p5), %s430_s8, 256, %s432_s3, %s1813_s20, %s2073_s1, %s2073_s1, %s2075_s28  }
  0x2b   : > { %2108 = sst [smem:[#allocation25_spill]] %s1822_s15  ;;  %s1105_s5 = sadd.s32 4294967294, %s1655_s19  }
  0x2c   : > { %s46_s25 = sadd.s32 1, %s1647_s17  ;;  %s53_s21 = sadd.s32 1, %s1651_s18 }
  0x2d   : > { %p47_p9 = scmp.ge.s32.totalorder %s46_s25, 3  ;;  %s64_s26 = sadd.s32 1, %s1635_s14 }
  0x2e   : > { %p71_p10 = scmp.ne.s32.totalorder %s1635_s14, %s1631_s13  ;;  %p77_p11 = scmp.ne.s32.totalorder %s1631_s13, %s1627_s12 }
  0x2f   : > { %s2154_s25 = smov (%p47_p9, %s46_s25), 0  ;;  %s2156_s21 = smov (!%p47_p9, %s53_s21), %s1651_s18 }
  0x30   : > { %2109 = sst [smem:[#allocation26_spill]] %s2154_s25  ;;  %s58_s3 = ssub.s32 %s1647_s17, %s2154_s25 }
  0x31   : > { %p1842_p12 = por %p72_p0, %p71_p10  ;;  %p55_p13 = scmp.ge.s32.totalorder %s2156_s21, 2 }
  0x32   : > { %p78_p1 = scmp.eq.s32.totalorder %s1822_s15, 0  ;;  %p315_p4 = scmp.eq.s32.totalorder %s1822_s15, 5 }
  0x33   : > { %p321_p6 = scmp.eq.s32.totalorder %s1105_s5, 5  ;;  %s2158_s21 = smov (%p55_p13, %s2156_s21), 0 }
  0x34   : > { %2111 = sst [smem:[#allocation27_spill]] %s2158_s21  ;;  %p1853_p7 = por %p78_p1, %p77_p11 }
  0x35   : > { %p1860_p0 = por %p105_p2, %p78_p1  ;;  %s57_s28 = ssub.s32 %s1651_s18, %s2158_s21 }
  0x36   : > { %s2112_s29 = scalar_select %p1853_p7, 1, 0 }
  0x37   : > { %s2114_s1 = scalar_select %p1860_p0, 1, 0 }
  0x38   : > { %2113 = sst [smem:[#allocation28_spill]] %s2112_s29  ;;  %p1869_p9 = por %p315_p4, %p71_p10 }
  0x39   : > { %2115 = sst [smem:[#allocation29_spill]] %s2114_s1  ;;  %s59_s5 = sor.u32 %s58_s3, %s57_s28 }
  0x3a   : > { %s2116_s4 = scalar_select %p1869_p9, 1, 0 }
  0x3b   : > { %p90_p13 = scmp.eq.s32.totalorder %s57_s28, 0  ;;  %p62_p3 = scmp.eq.s32.totalorder %s59_s5, 0 }
  0x3c   : > { %2117 = sst [smem:[#allocation30_spill]] %s2116_s4  ;;  %p1876_p8 = por %p321_p6, %p77_p11 }
  0x3d   : > { %s2119_s30 = sadd.s32 1, %s1623_s11  ;;  %s341_s21 = sand.u32 1, %s1635_s14  }
  0x3e   : > { %s1883_s16 = scalar_select %p90_p13, %s1623_s11, %s2119_s30  }
  0x3f   : > { %s1886_s10 = scalar_select %p62_p3, %s1635_s14, %s64_s26  }
  0x40   : > { %2120 = sst [smem:[#allocation31_spill]] %s1883_s16  ;;  %s1109_s1 = sshll.u32 %s1647_s17, 1 }
  0x41   : > { %2121 = sst [smem:[#allocation32_spill]] %s1886_s10  ;;  %s1108_s15 = sshll.u32 %s341_s21, 3 }
  0x42   : > { %s1195_s29 = smul.u32 6, %s1651_s18  ;;  %s345_s4 = scalar_lea.vmem [#allocation2], %s1108_s15 }
  0x43   : > { %s357_s3 = sshll.u32 %s345_s4, 4  ;;  %p2122_p2 = scmp.lt.s32.totalorder %s1655_s19, 6  ;;  %s358_s3 = int_to_ptr.vmem [resolvable:$true] %s357_s3 }
  0x44   : > { %s352_s28 = sadd.s32 %s1195_s29, %s1109_s1  ;;  %s400_s15 = scalar_lea.hbm %s2063_s2, %s1784_s24 }
  0x45   : > { %p1212_p10 = pnand %p2122_p2, %p1842_p12  ;;  %s1110_s5 = sshll.u32 %s352_s28, 2 }
  0x46   : > { %s354_s10 = scalar_lea.hbm %s2061_s0, %s1110_s5  ;;  %s401_s4 = sshll.u32 %s400_s15, 4  ;;  %s402_s4 = int_to_ptr.hbm [resolvable:$true] %s401_s4 }
  0x47   : > { %s355_s17 = sshll.u32 %s354_s10, 4  ;;  %s342_s8 = scalar_lea.sflag [#allocation3], %s341_s21  ;;  %s356_s17 = int_to_ptr.hbm [resolvable:$true] %s355_s17 }
  0x48   : > { %s2123_s18 = smov 4   ;;  %s2124_s1 = smov 64  }
  0x49   : > { %1214 = dma.hbm_to_vmem [thread:$0]  (!%p1212_p10), %s356_s17, 128, %s358_s3, %s342_s8, %s2124_s1, %s2124_s1, %s2123_s18  }
  0x4a   : > { %s395_s29 = scalar_lea.vmem [#allocation7], %s1781_s23  ;;  %s456_s16 = scalar_lea.hbm %s2067_s6, %s1784_s24 }
  0x4b   : > { %s403_s28 = sshll.u32 %s395_s29, 4  ;;  %s451_s21 = scalar_lea.vmem [#allocation10], %s1781_s23  ;;  %s404_s28 = int_to_ptr.vmem [resolvable:$true] %s403_s28 }
  0x4c   : > { %1220 = dma.hbm_to_vmem [thread:$0]  (!%p1793_p5), %s402_s4, 256, %s404_s28, %s1799_s22, %s2124_s1, %s2124_s1, %s2123_s18  }
  0x4d   : > { %s459_s5 = sshll.u32 %s451_s21, 4  ;;  %s457_s30 = sshll.u32 %s456_s16, 4  ;;  %s460_s5 = int_to_ptr.vmem [resolvable:$true] %s459_s5  ;;  %s458_s30 = int_to_ptr.hbm [resolvable:$true] %s457_s30 }
  0x4e   : > { %1226 = dma.hbm_to_vmem [thread:$0]  (!%p1793_p5), %s458_s30, 256, %s460_s5, %s1813_s20, %s2124_s1, %s2124_s1, %s2123_s18  }
  0x4f   : > { %s478_s26 = scalar_lea.hbm %s2068_s7, %s1784_s24  ;;  %s473_s22 = scalar_lea.vmem [#allocation11], %s1781_s23 }
  0x50   : > { %s479_s15 = sshll.u32 %s478_s26, 4  ;;  %s481_s4 = sshll.u32 %s473_s22, 4  ;;  %s480_s15 = int_to_ptr.hbm [resolvable:$true] %s479_s15  ;;  %s482_s4 = int_to_ptr.vmem [resolvable:$true] %s481_s4 }
  0x51   : > { %s2125_s8 = sand.u32 1, %s1623_s11   ;;  %p2126_p3 = scmp.ne.s32.totalorder %s2106_s27, 0 }
  0x52   : > { %s470_s29 = scalar_lea.sflag [#allocation12], %s2125_s8  ;;  %s1938_s28 = sand.u32 (!%p2126_p3), 1, %s1631_s13  }
  0x53   : > { %1229 = dma.hbm_to_vmem [thread:$0]  (!%p1793_p5), %s480_s15, 256, %s482_s4, %s470_s29, %s2124_s1, %s2124_s1, %s2123_s18  }
  0x54   : > { %499 = sbr.rel (%p2126_p3) target bundleno = 574 (0x23e), region = 56  ;;  %s1127_s23 = sshll.u32 (!%p2126_p3), %s1938_s28, 3 }
  0x55   : > { %s502_s24 = scalar_lea.sflag (!%p2126_p3), [#allocation3], %s1938_s28  ;;  %s505_s10 = scalar_lea.vmem (!%p2126_p3), [#allocation2], %s1127_s23 }
  0x59   : > { %1594 = dma.done.wait (%p1853_p7), %s502_s24, 128  }
  0x5a   : > { %1596 = vsyncadd (%p1853_p7), %s502_s24, 4294967168  ;;  %s2128_s9 = sld [smem:[#allocation25_spill]] }
  0x5b   : > { %s2129_s14 = sld [smem:[#allocation19_spill]] }
  0x60   : > { %s511_s1 = sand.u32 1, %s2128_s9  }
  0x61   : > { %s513_s27 = sand.u32 1, %s2129_s14   ;;  %s512_s21 = scalar_lea.sflag [#allocation6], %s511_s1 }
  0x62   : > { %s1948_s16 = sshll.u32 %s513_s27, 4 }
  0x63   : > { %s515_s5 = scalar_lea.vmem [#allocation5], %s1948_s16 }
  0x64   : > { %1598 = dma.done.wait (%p1860_p0), %s512_s21, 512  }
  0x65   : > { %1600 = vsyncadd (%p1860_p0), %s512_s21, 4294966784  ;;  %s525_s30 = scalar_lea.vmem [#allocation7], %s1948_s16  ;;  %s532_s17 = scalar_lea.sflag [#allocation9], %s511_s1 }
  0x66   : > { %s535_s3 = scalar_lea.vmem [#allocation8], %s1948_s16 }
  0x67   : > { %1602 = dma.done.wait (%p1860_p0), %s532_s17, 512  }
  0x68   : > { %1604 = vsyncadd (%p1860_p0), %s532_s17, 4294966784  ;;  %s545_s26 = scalar_lea.vmem [#allocation10], %s1948_s16  ;;  %s552_s15 = scalar_lea.sflag [#allocation12], %s513_s27 }
  0x69   : > { %s555_s22 = scalar_lea.vmem [#allocation11], %s1948_s16 }
  0x6a   : > { %1606 = dma.done.wait (%p1860_p0), %s552_s15, 256  }
  0x6b   : > { %1608 = vsyncadd (%p1860_p0), %s552_s15, 4294967040  ;;  %s2131_s4 = sld [smem:[#allocation22_spill]]  ;;  %v1188_v0 = vld [vmem:[%s525_s30 + $0x8] sm:$0xff]  ;;  %v1187_v1 = vld [vmem:[%s525_s30] sm:$0xff]  ;;  %vm665_vm0 = vcmask 261120   ;;  %v799_v42 = vlaneseq  ;;  %s849_s14 = scalar_lea.sflag [#allocation4], %s1938_s28 }
  0x6c   : > { %s2132_s23 = sld [smem:[#allocation34_spill]]  ;;  %675 = vmatpush.bf16.msra.mxu0 %v1188_v0  ;;  %v1186_v2 = vld [vmem:[%s505_s10] sm:$0xff]  ;;  %v1189_v4 = vld [vmem:[%s535_s3] sm:$0xff] }
  0x6d   : > { %s2133_s18 = sld [smem:[#allocation36_spill]]  ;;  %v1190_v3 = vld [vmem:[%s535_s3 + $0x8] sm:$0xff]  ;;  %v1191_v14 = vld [vmem:[%s545_s26] sm:$0xff]  ;;  %v800_v45 = vand.u32 127, %v799_v42 }
  0x6e   : > { %715 = vmatpush.bf16.msra.mxu1 %v1190_v3  ;;  %v1192_v13 = vld [vmem:[%s545_s26 + $0x8] sm:$0xff]  ;;  %v1193_v16 = vld [vmem:[%s555_s22] sm:$0xff]  ;;  %s2134_s21 = sld [smem:[#allocation37_spill]] }
  0x6f   : > { %781 = vmatpush.bf16.msra.mxu3 %v1192_v13  ;;  %v1194_v15 = vld [vmem:[%s555_s22 + $0x8] sm:$0xff]  ;;  %v795_v29 = vld [vmem:[%s515_s5] sm:$0xff]  ;;  %s2135_s17 = sld [smem:[#allocation21_spill]]  ;;  %vm801_vm1 = vcmp.ge.s32.totalorder %v800_v45, 4  ;;  %vm802_vm2 = vcmp.lt.s32.totalorder %v800_v45, 8 }
  0x70   : > { %676 = vmatpush.bf16.msra.mxu0 %v1187_v1  ;;  %755 = vmatpush.bf16.msra.mxu2 %v1194_v15  ;;  %v796_v36 = vld [vmem:[%s515_s5 + $0x8] sm:$0xff]  ;;  %s1133_s5 = sshll.u32 %s1938_s28, 4  ;;  %vm2002_vm4 = vmand %vm801_vm1, %vm802_vm2 }
  0x71   : > { %p627_p5 = scmp.lt.s32.totalorder %s2131_s4, 1  ;;  %s1196_s3 = smul.u32 6, %s2131_s4 }
  0x72   : > { %716 = vmatpush.bf16.msra.mxu1 %v1189_v4  ;;  %s624_s20 = scalar_lea.vmem [#allocation13], %s1133_s5 }
  0x73   : > { %s1969_s8 = scalar_select %p627_p5, %s2131_s4, 1  ;;  %1146 = vmatmul.msk.bf16.vlgmr.msra.gmra.mxu0 %vm665_vm0, %v1186_v2  ;;  %782 = vmatpush.bf16.msra.mxu3 %v1191_v14 }
  0x74   : > { %756 = vmatpush.bf16.msra.mxu2 %v1193_v16 }
  0x75   : > { %s629_s24 = scalar_lea.vmem %s2132_s23, %s1969_s8  ;;  %s632_s1 = scalar_lea.vmem %s2133_s18, %s1969_s8 }
  0x76   : > { %v1330_v6 = vld [vmem:[%s629_s24] ss:$0 sm:$0xff]  ;;  %1173 = vmatmul.msk.bf16.vlgmr.msra.gmra.mxu3 %vm665_vm0, %v1186_v2  ;;  %s635_s30 = scalar_lea.vmem %s2134_s21, %s1969_s8  ;;  %s1177_s26 = sshll.u32 %s2135_s17, 1 }
  0x77   : > { %v1331_v18 = vld [vmem:[%s632_s1] ss:$0 sm:$0xff]  ;;  %s862_s16 = sadd.s32 %s1196_s3, %s1177_s26  ;;  %s2138_s8 = sld [smem:[#allocation38_spill]] }
  0x78   : > { %v1332_v26 = vld [vmem:[%s635_s30] ss:$0 sm:$0xff]  ;;  %s1178_s15 = sshll.u32 %s862_s16, 3  ;;  %s865_s23 = sshll.u32 %s624_s20, 4  ;;  %s866_s23 = int_to_ptr.vmem [resolvable:$true] %s865_s23 }
  0x7d   : > { %s864_s29 = scalar_lea.hbm %s2138_s8, %s1178_s15  ;;  %s1541_s21 = scalar_lea.hbm %s2138_s8, 96 }
  0x7e   : > { %s867_s24 = sshll.u32 %s864_s29, 4  ;;  %s868_s24 = int_to_ptr.hbm [resolvable:$true] %s867_s24 }
  0x7f   : > { %s1535_s18 = sshra.s32 %s868_s24, 4  ;;  %s1536_s18 = int_to_ptr.hbm [resolvable:$true] %s1535_s18 }
  0x80   : > { %s1537_s1 = scalar_lea.hbm %s1536_s18, 16  ;;  %p1542_p4 = scmp.lt.s32.totalorder %s1536_s18, %s2138_s8 }
  0x81   : > { %p1538_p11 = scmp.ne.s32.totalorder %s1536_s18, %s1537_s1  ;;  %p1543_p6 = scmp.lt.s32.totalorder %s1541_s21, %s1537_s1 }
  0x83   : > { %p1539_p12 = pnand %p1538_p11, %p1869_p9  ;;  %p1544_p7 = por %p1543_p6, %p1542_p4 }
  0x85   : > { %p1540_p1 = pneg %p1539_p12 }
  0x87   : > { %p1545_p0 = pnand %p1544_p7, %p1540_p1 }
  0xf0   : > { %v678_v5 = vpop.f32.mrf.mxu0 }
  0xf1   : > { %v679_v7 = vadd.f32 %v1330_v6, %v678_v5 }
  0xf3   : > { %v683_v10 = vmax.f32 %v679_v7, 0.0 }
  0xf8   : > { %v680_v8 = vpop.f32.mrf.mxu0 }
  0xf9   : > { %v681_v9 = vadd.f32 %v1330_v6, %v680_v8  ;;  %v784_v25 = vpop.f32.mrf.mxu3 }
  0xfb   : > { %v684_v11 = vmax.f32 %v681_v9, 0.0 }
  0xfd   : > { %v685_v12 = vpack.c.bf16 %v684_v11, %v683_v10 }
  0xff   : > { %1155 = vmatmul.msk.bf16.vlgmr.msra.gmra.mxu1 %vm665_vm0, %v685_v12 }
 0x101   : > { %v786_v33 = vpop.f32.mrf.mxu3 }
 0x17c   : > { %v718_v17 = vpop.f32.mrf.mxu1 }
 0x17d   : > { %v719_v19 = vadd.f32 %v1331_v18, %v718_v17 }
 0x17f   : > { %v723_v22 = vmax.f32 %v719_v19, 0.0 }
 0x184   : > { %v720_v20 = vpop.f32.mrf.mxu1 }
 0x185   : > { %v721_v21 = vadd.f32 %v1331_v18, %v720_v20 }
 0x187   : > { %v724_v23 = vmax.f32 %v721_v21, 0.0 }
 0x189   : > { %v725_v24 = vpack.c.bf16 %v724_v23, %v723_v22 }
 0x18b   : > { %1164 = vmatmul.msk.bf16.vlgmr.msra.gmra.mxu2 %vm665_vm0, %v725_v24 }
 0x20e   : > { %v758_v27 = vpop.f32.mrf.mxu2 }
 0x20f   : > { %v785_v28 = vadd.f32 %v784_v25, %v758_v27 }
 0x211   : > { %v793_v30 = vadd.f32 %v1332_v26, %v785_v28 }
 0x213   : > { %v797_v31 = vadd.f32 %v795_v29, %v793_v30 }
 0x215   : > { %v1174_v32 = vmul.f32 -1.442695, %v797_v31 }
 0x216   : > { %v760_v34 = vpop.f32.mrf.mxu2 }
 0x217   : > { %1333 = vpow2.f32 %v1174_v32  ;;  %v787_v35 = vadd.f32 %v786_v33, %v760_v34 }
 0x219   : > { %v794_v37 = vadd.f32 %v1332_v26, %v787_v35 }
 0x21b   : > { %v798_v38 = vadd.f32 %v796_v36, %v794_v37 }
 0x21d   : > { %v1334_v39 = vpop.eup %1333  ;;  %v1175_v40 = vmul.f32 -1.442695, %v798_v38 }
 0x21e   : > { %v810_v41 = vadd.f32 1.0, %v1334_v39 }
 0x21f   : > { %1335 = vpow2.f32 %v1175_v40 }
 0x220   : > { %1337 = vrcp.f32 %v810_v41  ;;  %v823_v49 = vand.u32 2147483648, %v810_v41  ;;  %v821_v51 = vand.u32 2147483647, %v810_v41  ;;  %vm817_vm5 = vweird.f32 %v810_v41 }
 0x222   : > { %v824_v55 = vor.u32 1.1754944e-38, %v823_v49  ;;  %vm822_vm7 = vcmp.eq.f32.partialorder %v821_v51, 8.507059e+37 }
 0x225   : > { %v1336_v43 = vpop.eup %1335 }
 0x226   : > { %v1338_v44 = vpop.eup %1337  ;;  %v811_v46 = vadd.f32 1.0, %v1336_v43 }
 0x227   : > { %v813_v47 = vmul.f32 %v1338_v44, %v810_v41  ;;  %vm818_vm3 = vweird.f32 %v1338_v44 }
 0x228   : > { %1339 = vrcp.f32 %v811_v46  ;;  %vm819_vm6 = vmor %vm817_vm5, %vm818_vm3  ;;  %v838_v61 = vand.u32 2147483648, %v811_v46  ;;  %v836_v63 = vand.u32 2147483647, %v811_v46  ;;  %vm832_vm9 = vweird.f32 %v811_v46 }
 0x229   : > { %v814_v48 = vsub.f32 1.0, %v813_v47 }
 0x22a   : > { %v839_v1 = vor.u32 1.1754944e-38, %v838_v61  ;;  %vm837_vm11 = vcmp.eq.f32.partialorder %v836_v63, 8.507059e+37 }
 0x22b   : > { %v815_v50 = vmul.f32 %v1338_v44, %v814_v48 }
 0x22d   : > { %v816_v53 = vadd.f32 %v1338_v44, %v815_v50 }
 0x22e   : > { %v1340_v54 = vpop.eup %1339 }
 0x22f   : > { %v820_v56 = vsel %vm819_vm6, %v1338_v44, %v816_v53  ;;  %v828_v57 = vmul.f32 %v1340_v54, %v811_v46  ;;  %vm833_vm8 = vweird.f32 %v1340_v54 }
 0x230   : > { %v825_v58 = vsel %vm822_vm7, %v824_v55, %v820_v56  ;;  %vm834_vm10 = vmor %vm832_vm9, %vm833_vm8 }
 0x231   : > { %v844_v59 = vsel %vm2002_vm4, %v825_v58, %v797_v31  ;;  %v829_v60 = vsub.f32 1.0, %v828_v57 }
 0x232   : > { %846 = vst [vmem:[%s624_s20] sm:$0xff] %v844_v59 }
 0x233   : > { %v830_v62 = vmul.f32 %v1340_v54, %v829_v60 }
 0x235   : > { %v831_v0 = vadd.f32 %v1340_v54, %v830_v62 }
 0x237   : > { %v835_v2 = vsel %vm834_vm10, %v1340_v54, %v831_v0 }
 0x238   : > { %v840_v3 = vsel %vm837_vm11, %v839_v1, %v835_v2 }
 0x239   : > { %v845_v4 = vsel %vm2002_vm4, %v840_v3, %v798_v38 }
 0x23a   : > { %847 = vst [vmem:[%s624_s20 + $0x8] sm:$0xff] %v845_v4 }
 0x23b   : > { %1548 = shalt.err (!%p1545_p0)
}
 0x23c   : > { %s1661_s28 = smov 128   ;;  %s1662_s3 = smov 8  }
 0x23d   : > { %1209 = dma.vmem_to_hbm [thread:$0]  (%p1869_p9), %s866_s23, 256, %s868_s24, %s849_s14, %s1661_s28, %s1661_s28, %s1662_s3  }
 0x23e PF: > { %p1235_p13 = scmp.ge.s32.totalorder %s1655_s19, 2  ;;  %s882_s26 = sand.u32 1, %s1627_s12  }
 0x23f   : > { %s883_s16 = scalar_lea.sflag [#allocation4], %s882_s26 }
 0x240   : > { %p1231_p2 = pnand %p1235_p13, %p1876_p8 }
 0x242   : > { %p1232_p10 = pneg %p1231_p2 }
 0x244   : > { %1610 = dma.done.wait (%p1232_p10), %s883_s16, 256  }
 0x245   : > { %1612 = vsyncadd (%p1232_p10), %s883_s16, 4294967040  ;;  %s34_s19 = sadd.s32 1, %s1655_s19   ;;  %s2140_s30 = sld [smem:[#allocation19_spill]] }
 0x246   : > { %p31_p3 = scmp.ge.s32.totalorder %s34_s19, 8   ;;  %s2141_s5 = sld [smem:[#allocation31_spill]] }
 0x247   : > { %s2142_s15 = sld [smem:[#allocation20_spill]]  ;;  %s2148_s10 = smov %s1623_s11 }
 0x248   : > { %s2143_s14 = sld [smem:[#allocation32_spill]]  ;;  %s2150_s12 = smov %s1631_s13 }
 0x249   : > { %s2144_s22 = sld [smem:[#allocation23_spill]] }
 0x24a   : > { %s2145_s16 = sld [smem:[#allocation24_spill]] }
 0x24b   : > { %s2146_s17 = sld [smem:[#allocation26_spill]]  ;;  %33 = sbr.rel (!%p31_p3) target bundleno = 22 (0x16), region = 171 }
 0x24c   : > { %s2147_s18 = sld [smem:[#allocation27_spill]]  ;;  %s2149_s11 = smov %s2141_s5 }
 0x24d   : > { %s2151_s13 = smov %s2142_s15 }
 0x24f   : > { %s2152_s15 = smov %s2144_s22 }
 0x250   :  { %889 = vsyncpa [#allocation3], 1 }
 0x251   :  { %891 = vsyncpa [#allocation3 + $0x1], 1 }
 0x252   :  { %892 = vsyncpa [#allocation6], 1 }
 0x253   :  { %894 = vsyncpa [#allocation6 + $0x1], 1 }
 0x254   :  { %895 = vsyncpa [#allocation9], 1 }
 0x255   :  { %897 = vsyncpa [#allocation9 + $0x1], 1 }
 0x256   :  { %898 = vsyncpa [#allocation12], 1 }
 0x257   :  { %900 = vsyncpa [#allocation12 + $0x1], 1 }
 0x258   :  { %901 = vsyncpa [#allocation4], 1 }
 0x259   :  { %903 = vsyncpa [#allocation4 + $0x1], 1 }

</bundles_post_ra>
